<compile_context>
chip_gen: v7x
topology: tpu7x:2x2x1
jax: 0.10.0
libtpu: 0.0.40
codegen_flags: <defaults>
</compile_context>

<pallas_src>
import functools

import jax
import jax.numpy as jnp
from jax.experimental import pallas as pl
from jax.experimental.pallas import tpu as pltpu


def _round_up(x: int, m: int) -> int:
    return (x + m - 1) // m * m


def _convtranse_rs_kernel(C_blk, K, H_valid,
                          heads_ref, tails_ref,
                          bn0s_ref, bn0b_ref,
                          convw_ref, convb_ref,
                          fcw_ref, fcb_ref, rel_ref,
                          out_ref,
                          y_acc, xs_ref):
    c_idx = pl.program_id(1)
    n_c = pl.num_programs(1)
    B_blk, H_pad = heads_ref.shape
    pad = K // 2

    # ---- once per batch tile: bn0 + shifted copies of both input channels ----
    @pl.when(c_idx == 0)
    def _init():
        ch = [
            (heads_ref[...] * bn0s_ref[0] + bn0b_ref[0]).astype(jnp.bfloat16),
            (tails_ref[...] * bn0s_ref[1] + bn0b_ref[1]).astype(jnp.bfloat16),
        ]
        # One-hot lane-shift matrices (channel-independent, built K times per
        # batch tile instead of 2*C*K times):  shifted[b, i] = x[b, i + k - pad]
        # with zero fill outside the valid [0, H) range (conv zero padding).
        src = jax.lax.broadcasted_iota(jnp.int32, (H_pad, H_pad), 0)  # input pos j
        dst = jax.lax.broadcasted_iota(jnp.int32, (H_pad, H_pad), 1)  # output pos i
        src_ok = src < H_valid
        for k in range(K):
            s = k - pad
            shift = jnp.where((src == dst + s) & src_ok, 1.0, 0.0)
            shift = shift.astype(jnp.bfloat16)
            for ic in range(2):
                xs_ref[ic * K + k] = jnp.dot(
                    ch[ic], shift, preferred_element_type=jnp.float32)
        # fc accumulator starts from the (bn2-folded) fc bias.
        y_acc[...] = jnp.zeros((B_blk, H_pad), jnp.float32) + fcb_ref[...]

    # ---- conv (bn1 folded) -> relu -> fc contribution of this channel block ----
    feats = []
    for cl in range(C_blk):
        c_abs = c_idx * C_blk + cl
        acc = jnp.zeros((B_blk, H_pad), jnp.float32) + convb_ref[c_abs]
        for ic in range(2):
            for k in range(K):
                w = convw_ref[(c_abs * 2 + ic) * K + k]       # scalar from SMEM
                acc = acc + w * xs_ref[ic * K + k]
        feats.append(jnp.maximum(acc, 0.0).astype(jnp.bfloat16))

    if C_blk == 1:
        feat = feats[0]
        w_blk = fcw_ref[0]                                    # (Hp, Hp) bf16
    else:
        feat = jnp.concatenate(feats, axis=-1)                # (B_blk, C_blk*Hp)
        w_blk = fcw_ref[...].reshape(C_blk * H_pad, H_pad)

    y_acc[...] += jnp.dot(feat, w_blk, preferred_element_type=jnp.float32)

    # ---- finalize: relu (bn2 already folded into fc) + relation scores ----
    @pl.when(c_idx == n_c - 1)
    def _done():
        y = jnp.maximum(y_acc[...], 0.0).astype(jnp.bfloat16)
        out_ref[...] = jax.lax.dot_general(
            y, rel_ref[...],
            dimension_numbers=(((1,), (1,)), ((), ())),
            preferred_element_type=jnp.float32)


def conv_trans_e_rs(heads, tails, rel_emb, params, *, eps=1e-5,
                    b_block_size=None, c_block_size=1):
    """Eval-mode ConvTransERS.forward as one Pallas TPU kernel."""
    B, H = heads.shape
    R = rel_emb.shape[0]
    C, n_in, K = params["conv_w"].shape
    assert n_in == 2, "ConvTransERS stacks exactly (heads, tails)"

    # lane/sublane-dense padded sizes
    Hp = _round_up(H, 128)
    Rp = _round_up(R, 128)
    B8 = _round_up(B, 8)
    if b_block_size is None:
        b_block_size = 256
    B_blk = min(_round_up(b_block_size, 8), B8)
    Bp = _round_up(B, B_blk)

    C_blk = int(c_block_size)
    if C_blk < 1 or C % C_blk != 0:
        C_blk = 1

    # ---- fold eval-mode BatchNorms into the surrounding linear ops ----
    def bn_scale_shift(p):
        s = p["gamma"] / jnp.sqrt(p["var"] + eps)
        return s, p["beta"] - p["mean"] * s

    s0, b0 = bn_scale_shift(params["bn0"])     # (2,)  applied in-kernel
    s1, b1 = bn_scale_shift(params["bn1"])     # (C,)  folded into conv
    s2, b2 = bn_scale_shift(params["bn2"])     # (H,)  folded into fc

    conv_w = params["conv_w"] * s1[:, None, None]             # (C, 2, K)
    conv_b = params["conv_b"] * s1 + b1                       # (C,)
    fc_w = params["fc_w"] * s2[:, None]                       # (H, C*H)
    fc_b = params["fc_b"] * s2 + b2                           # (H,)

    # ---- pack / pad operands ----
    f32 = jnp.float32
    heads_p = jnp.pad(heads.astype(f32), ((0, Bp - B), (0, Hp - H)))
    tails_p = jnp.pad(tails.astype(f32), ((0, Bp - B), (0, Hp - H)))

    # fc weight as (C, Hp, Hp) bf16:  fcw[c, j, o] = fc_w[o, c*H + j]
    fcw = jnp.pad(fc_w.T.reshape(C, H, H),
                  ((0, 0), (0, Hp - H), (0, Hp - H))).astype(jnp.bfloat16)
    fcb = jnp.pad(fc_b, (0, Hp - H)).reshape(1, Hp).astype(f32)
    rel = jnp.pad(rel_emb.astype(f32),
                  ((0, Rp - R), (0, Hp - H))).astype(jnp.bfloat16)

    convw = conv_w.reshape(-1).astype(f32)                    # (C*2*K,) -> SMEM
    convb = conv_b.astype(f32)                                # (C,)     -> SMEM
    bn0s = s0.astype(f32)                                     # (2,)     -> SMEM
    bn0b = b0.astype(f32)                                     # (2,)     -> SMEM

    smem = pl.BlockSpec(memory_space=pltpu.MemorySpace.SMEM)
    grid = (Bp // B_blk, C // C_blk)

    kernel = functools.partial(_convtranse_rs_kernel, C_blk, K, H)

    out = pl.pallas_call(
        kernel,
        out_shape=jax.ShapeDtypeStruct((Bp, Rp), f32),
        grid_spec=pltpu.PrefetchScalarGridSpec(
            num_scalar_prefetch=0,
            grid=grid,
            in_specs=[
                pl.BlockSpec((B_blk, Hp), lambda b, c: (b, 0)),        # heads
                pl.BlockSpec((B_blk, Hp), lambda b, c: (b, 0)),        # tails
                smem, smem,                                            # bn0 s/b
                smem, smem,                                            # conv w/b (bn1 folded)
                pl.BlockSpec((C_blk, Hp, Hp), lambda b, c: (c, 0, 0)),  # fc w (bn2 folded), streamed over c
                pl.BlockSpec((1, Hp), lambda b, c: (0, 0)),            # fc bias
                pl.BlockSpec((Rp, Hp), lambda b, c: (0, 0)),           # rel_emb (R, H)
            ],
            out_specs=pl.BlockSpec((B_blk, Rp), lambda b, c: (b, 0)),
            scratch_shapes=[
                pltpu.VMEM((B_blk, Hp), f32),          # fc accumulator
                pltpu.VMEM((2 * K, B_blk, Hp), f32),   # shifted bn0'd channels
            ],
        ),
        compiler_params=pltpu.CompilerParams(
            dimension_semantics=("parallel", "arbitrary")),
    )(heads_p, tails_p, bn0s, bn0b, convw, convb, fcw, fcb, rel)

    return out[:B, :R]


def reference(heads, tails, rel_emb, params, eps=1e-5):
    """Pure-JAX eval-mode reference of ConvTransERS.forward."""
    B, H = heads.shape
    C, _, K = params["conv_w"].shape
    pad = K // 2

    def bn(x, p, axis):
        shape = [1] * x.ndim
        shape[axis] = -1
        s = (p["gamma"] / jnp.sqrt(p["var"] + eps)).reshape(shape)
        b = (p["beta"] - p["mean"] * p["gamma"] / jnp.sqrt(p["var"] + eps)).reshape(shape)
        return x * s + b

    x = jnp.stack([heads, tails], axis=1)                     # (B, 2, H)
    x = bn(x, params["bn0"], axis=1)
    xpad = jnp.pad(x, ((0, 0), (0, 0), (pad, pad)))
    conv = jnp.stack([
        sum(params["conv_w"][c, ic, k] * xpad[:, ic, k:k + H]
            for ic in range(2) for k in range(K)) + params["conv_b"][c]
        for c in range(C)], axis=1)                           # (B, C, H)
    h = jnp.maximum(bn(conv, params["bn1"], axis=1), 0.0)
    flat = h.reshape(B, C * H)
    y = jnp.dot(flat, params["fc_w"].T,
                precision=jax.lax.Precision.HIGHEST) + params["fc_b"]
    y = jnp.maximum(bn(y, params["bn2"], axis=1), 0.0)
    return jnp.dot(y, rel_emb.T, precision=jax.lax.Precision.HIGHEST)


if __name__ == "__main__":
    B, H, C, K, R = 8, 32, 4, 3, 16     # batch, hidden_size, num_channels, kernel_size, num_rels

    key = jax.random.PRNGKey(0)
    ks = jax.random.split(key, 12)

    def rand_bn(k, n):
        k1, k2, k3, k4 = jax.random.split(k, 4)
        return dict(
            gamma=1.0 + 0.2 * jax.random.normal(k1, (n,), jnp.float32),
            beta=0.1 * jax.random.normal(k2, (n,), jnp.float32),
            mean=0.1 * jax.random.normal(k3, (n,), jnp.float32),
            var=1.0 + 0.2 * jax.random.uniform(k4, (n,), jnp.float32),
        )

    heads = jax.random.normal(ks[0], (B, H), jnp.float32)
    tails = jax.random.normal(ks[1], (B, H), jnp.float32)
    rel_emb = jax.random.normal(ks[2], (R, H), jnp.float32)

    params = dict(
        conv_w=0.1 * jax.random.normal(ks[3], (C, 2, K), jnp.float32),
        conv_b=0.05 * jax.random.normal(ks[4], (C,), jnp.float32),
        fc_w=jax.random.normal(ks[5], (H, C * H), jnp.float32) / jnp.sqrt(C * H),
        fc_b=0.05 * jax.random.normal(ks[6], (H,), jnp.float32),
        bn0=rand_bn(ks[7], 2),
        bn1=rand_bn(ks[8], C),
        bn2=rand_bn(ks[9], H),
    )

    out = conv_trans_e_rs(heads, tails, rel_emb, params)
    out = jax.block_until_ready(out)
    assert out.shape == (B, R), out.shape

    ref = reference(heads, tails, rel_emb, params)
    # bf16 MXU operands (f32 accumulation) -> looser tolerance than pure f32.
    if not jnp.allclose(out, ref, rtol=5e-2, atol=1e-1):
        raise AssertionError(
            f"mismatch vs reference: max abs err = {jnp.max(jnp.abs(out - ref))}")

    print("KERNEL_OK")
</pallas_src>

<mosaic_0001>
module attributes {stable_mosaic.version = 11 : i64} {
  func.func @_convtranse_rs_kernel(%arg0: i32, %arg1: i32, %arg2: memref<8x128xf32, #tpu.memory_space<vmem>>, %arg3: memref<8x128xf32, #tpu.memory_space<vmem>>, %arg4: memref<2xf32, #tpu.memory_space<smem>>, %arg5: memref<2xf32, #tpu.memory_space<smem>>, %arg6: memref<24xf32, #tpu.memory_space<smem>>, %arg7: memref<4xf32, #tpu.memory_space<smem>>, %arg8: memref<1x128x128xbf16, #tpu.memory_space<vmem>>, %arg9: memref<1x128xf32, #tpu.memory_space<vmem>>, %arg10: memref<128x128xbf16, #tpu.memory_space<vmem>>, %arg11: memref<8x128xf32, #tpu.memory_space<vmem>>, %arg12: memref<8x128xf32, #tpu.memory_space<vmem>>, %arg13: memref<6x8x128xf32, #tpu.memory_space<vmem>>) attributes {dimension_semantics = [#tpu.dimension_semantics<parallel>, #tpu.dimension_semantics<arbitrary>], iteration_bounds = array<i64: 1, 4>, scalar_prefetch = 0 : i64, scratch_operands = 2 : i64, tpu.core_type = #tpu.core_type<tc>, window_params = [{transform_indices = @transform_0, window_bounds = array<i64: 8, 128>}, {transform_indices = @transform_1, window_bounds = array<i64: 8, 128>}, {transform_indices = @transform_2, window_bounds = array<i64: 2>}, {transform_indices = @transform_3, window_bounds = array<i64: 2>}, {transform_indices = @transform_4, window_bounds = array<i64: 24>}, {transform_indices = @transform_5, window_bounds = array<i64: 4>}, {transform_indices = @transform_6, window_bounds = array<i64: 1, 128, 128>}, {pipeline_mode = #tpu.pipeline_mode<synchronous>, transform_indices = @transform_7, window_bounds = array<i64: 1, 128>}, {pipeline_mode = #tpu.pipeline_mode<synchronous>, transform_indices = @transform_8, window_bounds = array<i64: 128, 128>}, {transform_indices = @transform_9, window_bounds = array<i64: 8, 128>}]} {
    %c0_i32 = arith.constant 0 : i32
    %0 = arith.cmpi eq, %arg1, %c0_i32 : i32
    %1 = arith.extui %0 : i1 to i32
    %c0_i32_0 = arith.constant 0 : i32
    %2 = arith.cmpi ne, %1, %c0_i32_0 : i32
    scf.if %2 {
      %c0_47 = arith.constant 0 : index
      %c0_48 = arith.constant 0 : index
      %88 = vector.load %arg2[%c0_47, %c0_48] : memref<8x128xf32, #tpu.memory_space<vmem>>, vector<8x128xf32>
      %c0_49 = arith.constant 0 : index
      %89 = memref.load %arg4[%c0_49] : memref<2xf32, #tpu.memory_space<smem>>
      %90 = vector.broadcast %89 : f32 to vector<8x128xf32>
      %91 = arith.mulf %88, %90 : vector<8x128xf32>
      %c0_50 = arith.constant 0 : index
      %92 = memref.load %arg5[%c0_50] : memref<2xf32, #tpu.memory_space<smem>>
      %93 = vector.broadcast %92 : f32 to vector<8x128xf32>
      %94 = arith.addf %91, %93 : vector<8x128xf32>
      %95 = arith.truncf %94 : vector<8x128xf32> to vector<8x128xbf16>
      %c0_51 = arith.constant 0 : index
      %c0_52 = arith.constant 0 : index
      %96 = vector.load %arg3[%c0_51, %c0_52] : memref<8x128xf32, #tpu.memory_space<vmem>>, vector<8x128xf32>
      %c1_53 = arith.constant 1 : index
      %97 = memref.load %arg4[%c1_53] : memref<2xf32, #tpu.memory_space<smem>>
      %98 = vector.broadcast %97 : f32 to vector<8x128xf32>
      %99 = arith.mulf %96, %98 : vector<8x128xf32>
      %c1_54 = arith.constant 1 : index
      %100 = memref.load %arg5[%c1_54] : memref<2xf32, #tpu.memory_space<smem>>
      %101 = vector.broadcast %100 : f32 to vector<8x128xf32>
      %102 = arith.addf %99, %101 : vector<8x128xf32>
      %103 = arith.truncf %102 : vector<8x128xf32> to vector<8x128xbf16>
      %104 = tpu.iota {dimensions = array<i32: 0>} : vector<128x128xi32>
      %105 = tpu.iota {dimensions = array<i32: 1>} : vector<128x128xi32>
      %c32_i32 = arith.constant 32 : i32
      %106 = vector.broadcast %c32_i32 : i32 to vector<128x128xi32>
      %107 = arith.cmpi slt, %104, %106 : vector<128x128xi32>
      %c-1_i32 = arith.constant -1 : i32
      %108 = vector.broadcast %c-1_i32 : i32 to vector<128x128xi32>
      %109 = arith.addi %105, %108 : vector<128x128xi32>
      %110 = arith.cmpi eq, %104, %109 : vector<128x128xi32>
      %111 = arith.andi %110, %107 : vector<128x128xi1>
      %cst_55 = arith.constant 1.000000e+00 : f32
      %cst_56 = arith.constant 0.000000e+00 : f32
      %112 = vector.broadcast %cst_55 : f32 to vector<128x128xf32>
      %113 = vector.broadcast %cst_56 : f32 to vector<128x128xf32>
      %114 = arith.select %111, %112, %113 : vector<128x128xi1>, vector<128x128xf32>
      %115 = arith.truncf %114 : vector<128x128xf32> to vector<128x128xbf16>
      %cst_57 = arith.constant dense<0.000000e+00> : vector<8x128xf32>
      %116 = tpu.matmul %95, %115, %cst_57 {dimension_numbers = #tpu.dot_dimension_numbers<[1], [0], [0], [1], [0, 0, 1, 1], [], []>} : vector<8x128xbf16>, vector<128x128xbf16>, vector<8x128xf32> -> vector<8x128xf32>
      %c0_58 = arith.constant 0 : index
      %c0_59 = arith.constant 0 : index
      %c0_60 = arith.constant 0 : index
      %117 = vector.load %arg13[%c0_58, %c0_59, %c0_60] : memref<6x8x128xf32, #tpu.memory_space<vmem>>, vector<1x8x128xf32>
      %118 = vector.shape_cast %117 : vector<1x8x128xf32> to vector<8x128xf32>
      %119 = vector.shape_cast %116 : vector<8x128xf32> to vector<1x8x128xf32>
      tpu.vector_store %arg13[%c0_58, %c0_59, %c0_60], %119 {strides = array<i32>} : memref<6x8x128xf32, #tpu.memory_space<vmem>>, vector<1x8x128xf32>,
      %cst_61 = arith.constant dense<0.000000e+00> : vector<8x128xf32>
      %120 = tpu.matmul %103, %115, %cst_61 {dimension_numbers = #tpu.dot_dimension_numbers<[1], [0], [0], [1], [0, 0, 1, 1], [], []>} : vector<8x128xbf16>, vector<128x128xbf16>, vector<8x128xf32> -> vector<8x128xf32>
      %c3_62 = arith.constant 3 : index
      %c0_63 = arith.constant 0 : index
      %c0_64 = arith.constant 0 : index
      %121 = vector.load %arg13[%c3_62, %c0_63, %c0_64] : memref<6x8x128xf32, #tpu.memory_space<vmem>>, vector<1x8x128xf32>
      %122 = vector.shape_cast %121 : vector<1x8x128xf32> to vector<8x128xf32>
      %123 = vector.shape_cast %120 : vector<8x128xf32> to vector<1x8x128xf32>
      tpu.vector_store %arg13[%c3_62, %c0_63, %c0_64], %123 {strides = array<i32>} : memref<6x8x128xf32, #tpu.memory_space<vmem>>, vector<1x8x128xf32>,
      %c0_i32_65 = arith.constant 0 : i32
      %124 = vector.broadcast %c0_i32_65 : i32 to vector<128x128xi32>
      %125 = arith.addi %105, %124 : vector<128x128xi32>
      %126 = arith.cmpi eq, %104, %125 : vector<128x128xi32>
      %127 = arith.andi %126, %107 : vector<128x128xi1>
      %cst_66 = arith.constant 1.000000e+00 : f32
      %cst_67 = arith.constant 0.000000e+00 : f32
      %128 = vector.broadcast %cst_66 : f32 to vector<128x128xf32>
      %129 = vector.broadcast %cst_67 : f32 to vector<128x128xf32>
      %130 = arith.select %127, %128, %129 : vector<128x128xi1>, vector<128x128xf32>
      %131 = arith.truncf %130 : vector<128x128xf32> to vector<128x128xbf16>
      %cst_68 = arith.constant dense<0.000000e+00> : vector<8x128xf32>
      %132 = tpu.matmul %95, %131, %cst_68 {dimension_numbers = #tpu.dot_dimension_numbers<[1], [0], [0], [1], [0, 0, 1, 1], [], []>} : vector<8x128xbf16>, vector<128x128xbf16>, vector<8x128xf32> -> vector<8x128xf32>
      %c1_69 = arith.constant 1 : index
      %c0_70 = arith.constant 0 : index
      %c0_71 = arith.constant 0 : index
      %133 = vector.load %arg13[%c1_69, %c0_70, %c0_71] : memref<6x8x128xf32, #tpu.memory_space<vmem>>, vector<1x8x128xf32>
      %134 = vector.shape_cast %133 : vector<1x8x128xf32> to vector<8x128xf32>
      %135 = vector.shape_cast %132 : vector<8x128xf32> to vector<1x8x128xf32>
      tpu.vector_store %arg13[%c1_69, %c0_70, %c0_71], %135 {strides = array<i32>} : memref<6x8x128xf32, #tpu.memory_space<vmem>>, vector<1x8x128xf32>,
      %cst_72 = arith.constant dense<0.000000e+00> : vector<8x128xf32>
      %136 = tpu.matmul %103, %131, %cst_72 {dimension_numbers = #tpu.dot_dimension_numbers<[1], [0], [0], [1], [0, 0, 1, 1], [], []>} : vector<8x128xbf16>, vector<128x128xbf16>, vector<8x128xf32> -> vector<8x128xf32>
      %c4_73 = arith.constant 4 : index
      %c0_74 = arith.constant 0 : index
      %c0_75 = arith.constant 0 : index
      %137 = vector.load %arg13[%c4_73, %c0_74, %c0_75] : memref<6x8x128xf32, #tpu.memory_space<vmem>>, vector<1x8x128xf32>
      %138 = vector.shape_cast %137 : vector<1x8x128xf32> to vector<8x128xf32>
      %139 = vector.shape_cast %136 : vector<8x128xf32> to vector<1x8x128xf32>
      tpu.vector_store %arg13[%c4_73, %c0_74, %c0_75], %139 {strides = array<i32>} : memref<6x8x128xf32, #tpu.memory_space<vmem>>, vector<1x8x128xf32>,
      %c1_i32_76 = arith.constant 1 : i32
      %140 = vector.broadcast %c1_i32_76 : i32 to vector<128x128xi32>
      %141 = arith.addi %105, %140 : vector<128x128xi32>
      %142 = arith.cmpi eq, %104, %141 : vector<128x128xi32>
      %143 = arith.andi %142, %107 : vector<128x128xi1>
      %cst_77 = arith.constant 1.000000e+00 : f32
      %cst_78 = arith.constant 0.000000e+00 : f32
      %144 = vector.broadcast %cst_77 : f32 to vector<128x128xf32>
      %145 = vector.broadcast %cst_78 : f32 to vector<128x128xf32>
      %146 = arith.select %143, %144, %145 : vector<128x128xi1>, vector<128x128xf32>
      %147 = arith.truncf %146 : vector<128x128xf32> to vector<128x128xbf16>
      %cst_79 = arith.constant dense<0.000000e+00> : vector<8x128xf32>
      %148 = tpu.matmul %95, %147, %cst_79 {dimension_numbers = #tpu.dot_dimension_numbers<[1], [0], [0], [1], [0, 0, 1, 1], [], []>} : vector<8x128xbf16>, vector<128x128xbf16>, vector<8x128xf32> -> vector<8x128xf32>
      %c2_80 = arith.constant 2 : index
      %c0_81 = arith.constant 0 : index
      %c0_82 = arith.constant 0 : index
      %149 = vector.load %arg13[%c2_80, %c0_81, %c0_82] : memref<6x8x128xf32, #tpu.memory_space<vmem>>, vector<1x8x128xf32>
      %150 = vector.shape_cast %149 : vector<1x8x128xf32> to vector<8x128xf32>
      %151 = vector.shape_cast %148 : vector<8x128xf32> to vector<1x8x128xf32>
      tpu.vector_store %arg13[%c2_80, %c0_81, %c0_82], %151 {strides = array<i32>} : memref<6x8x128xf32, #tpu.memory_space<vmem>>, vector<1x8x128xf32>,
      %cst_83 = arith.constant dense<0.000000e+00> : vector<8x128xf32>
      %152 = tpu.matmul %103, %147, %cst_83 {dimension_numbers = #tpu.dot_dimension_numbers<[1], [0], [0], [1], [0, 0, 1, 1], [], []>} : vector<8x128xbf16>, vector<128x128xbf16>, vector<8x128xf32> -> vector<8x128xf32>
      %c5_84 = arith.constant 5 : index
      %c0_85 = arith.constant 0 : index
      %c0_86 = arith.constant 0 : index
      %153 = vector.load %arg13[%c5_84, %c0_85, %c0_86] : memref<6x8x128xf32, #tpu.memory_space<vmem>>, vector<1x8x128xf32>
      %154 = vector.shape_cast %153 : vector<1x8x128xf32> to vector<8x128xf32>
      %155 = vector.shape_cast %152 : vector<8x128xf32> to vector<1x8x128xf32>
      tpu.vector_store %arg13[%c5_84, %c0_85, %c0_86], %155 {strides = array<i32>} : memref<6x8x128xf32, #tpu.memory_space<vmem>>, vector<1x8x128xf32>,
      %cst_87 = arith.constant 0.000000e+00 : f32
      %156 = vector.broadcast %cst_87 : f32 to vector<8x128xf32>
      %c0_88 = arith.constant 0 : index
      %c0_89 = arith.constant 0 : index
      %157 = vector.load %arg9[%c0_88, %c0_89] : memref<1x128xf32, #tpu.memory_space<vmem>>, vector<1x128xf32>
      %158 = vector.broadcast %157 : vector<1x128xf32> to vector<8x128xf32>
      %159 = arith.addf %156, %158 : vector<8x128xf32>
      %c0_90 = arith.constant 0 : index
      %c0_91 = arith.constant 0 : index
      %160 = vector.load %arg12[%c0_90, %c0_91] : memref<8x128xf32, #tpu.memory_space<vmem>>, vector<8x128xf32>
      tpu.vector_store %arg12[%c0_90, %c0_91], %159 {strides = array<i32>} : memref<8x128xf32, #tpu.memory_space<vmem>>, vector<8x128xf32>,
    } else {
    }
    %c1_i32 = arith.constant 1 : i32
    %3 = arith.muli %arg1, %c1_i32 : i32
    %c0_i32_1 = arith.constant 0 : i32
    %4 = arith.addi %3, %c0_i32_1 : i32
    %cst = arith.constant 0.000000e+00 : f32
    %5 = vector.broadcast %cst : f32 to vector<8x128xf32>
    %6 = arith.index_cast %4 : i32 to index
    %7 = memref.load %arg7[%6] : memref<4xf32, #tpu.memory_space<smem>>
    %8 = vector.broadcast %7 : f32 to vector<8x128xf32>
    %9 = arith.addf %5, %8 : vector<8x128xf32>
    %c2_i32 = arith.constant 2 : i32
    %10 = arith.muli %4, %c2_i32 : i32
    %c0_i32_2 = arith.constant 0 : i32
    %11 = arith.addi %10, %c0_i32_2 : i32
    %c3_i32 = arith.constant 3 : i32
    %12 = arith.muli %11, %c3_i32 : i32
    %c0_i32_3 = arith.constant 0 : i32
    %13 = arith.addi %12, %c0_i32_3 : i32
    %14 = arith.index_cast %13 : i32 to index
    %15 = memref.load %arg6[%14] : memref<24xf32, #tpu.memory_space<smem>>
    %c0 = arith.constant 0 : index
    %c0_4 = arith.constant 0 : index
    %c0_5 = arith.constant 0 : index
    %16 = vector.load %arg13[%c0, %c0_4, %c0_5] : memref<6x8x128xf32, #tpu.memory_space<vmem>>, vector<1x8x128xf32>
    %17 = vector.shape_cast %16 : vector<1x8x128xf32> to vector<8x128xf32>
    %18 = vector.broadcast %15 : f32 to vector<8x128xf32>
    %19 = arith.mulf %18, %17 : vector<8x128xf32>
    %20 = arith.addf %9, %19 : vector<8x128xf32>
    %c2_i32_6 = arith.constant 2 : i32
    %21 = arith.muli %4, %c2_i32_6 : i32
    %c0_i32_7 = arith.constant 0 : i32
    %22 = arith.addi %21, %c0_i32_7 : i32
    %c3_i32_8 = arith.constant 3 : i32
    %23 = arith.muli %22, %c3_i32_8 : i32
    %c1_i32_9 = arith.constant 1 : i32
    %24 = arith.addi %23, %c1_i32_9 : i32
    %25 = arith.index_cast %24 : i32 to index
    %26 = memref.load %arg6[%25] : memref<24xf32, #tpu.memory_space<smem>>
    %c1 = arith.constant 1 : index
    %c0_10 = arith.constant 0 : index
    %c0_11 = arith.constant 0 : index
    %27 = vector.load %arg13[%c1, %c0_10, %c0_11] : memref<6x8x128xf32, #tpu.memory_space<vmem>>, vector<1x8x128xf32>
    %28 = vector.shape_cast %27 : vector<1x8x128xf32> to vector<8x128xf32>
    %29 = vector.broadcast %26 : f32 to vector<8x128xf32>
    %30 = arith.mulf %29, %28 : vector<8x128xf32>
    %31 = arith.addf %20, %30 : vector<8x128xf32>
    %c2_i32_12 = arith.constant 2 : i32
    %32 = arith.muli %4, %c2_i32_12 : i32
    %c0_i32_13 = arith.constant 0 : i32
    %33 = arith.addi %32, %c0_i32_13 : i32
    %c3_i32_14 = arith.constant 3 : i32
    %34 = arith.muli %33, %c3_i32_14 : i32
    %c2_i32_15 = arith.constant 2 : i32
    %35 = arith.addi %34, %c2_i32_15 : i32
    %36 = arith.index_cast %35 : i32 to index
    %37 = memref.load %arg6[%36] : memref<24xf32, #tpu.memory_space<smem>>
    %c2 = arith.constant 2 : index
    %c0_16 = arith.constant 0 : index
    %c0_17 = arith.constant 0 : index
    %38 = vector.load %arg13[%c2, %c0_16, %c0_17] : memref<6x8x128xf32, #tpu.memory_space<vmem>>, vector<1x8x128xf32>
    %39 = vector.shape_cast %38 : vector<1x8x128xf32> to vector<8x128xf32>
    %40 = vector.broadcast %37 : f32 to vector<8x128xf32>
    %41 = arith.mulf %40, %39 : vector<8x128xf32>
    %42 = arith.addf %31, %41 : vector<8x128xf32>
    %c2_i32_18 = arith.constant 2 : i32
    %43 = arith.muli %4, %c2_i32_18 : i32
    %c1_i32_19 = arith.constant 1 : i32
    %44 = arith.addi %43, %c1_i32_19 : i32
    %c3_i32_20 = arith.constant 3 : i32
    %45 = arith.muli %44, %c3_i32_20 : i32
    %c0_i32_21 = arith.constant 0 : i32
    %46 = arith.addi %45, %c0_i32_21 : i32
    %47 = arith.index_cast %46 : i32 to index
    %48 = memref.load %arg6[%47] : memref<24xf32, #tpu.memory_space<smem>>
    %c3 = arith.constant 3 : index
    %c0_22 = arith.constant 0 : index
    %c0_23 = arith.constant 0 : index
    %49 = vector.load %arg13[%c3, %c0_22, %c0_23] : memref<6x8x128xf32, #tpu.memory_space<vmem>>, vector<1x8x128xf32>
    %50 = vector.shape_cast %49 : vector<1x8x128xf32> to vector<8x128xf32>
    %51 = vector.broadcast %48 : f32 to vector<8x128xf32>
    %52 = arith.mulf %51, %50 : vector<8x128xf32>
    %53 = arith.addf %42, %52 : vector<8x128xf32>
    %c2_i32_24 = arith.constant 2 : i32
    %54 = arith.muli %4, %c2_i32_24 : i32
    %c1_i32_25 = arith.constant 1 : i32
    %55 = arith.addi %54, %c1_i32_25 : i32
    %c3_i32_26 = arith.constant 3 : i32
    %56 = arith.muli %55, %c3_i32_26 : i32
    %c1_i32_27 = arith.constant 1 : i32
    %57 = arith.addi %56, %c1_i32_27 : i32
    %58 = arith.index_cast %57 : i32 to index
    %59 = memref.load %arg6[%58] : memref<24xf32, #tpu.memory_space<smem>>
    %c4 = arith.constant 4 : index
    %c0_28 = arith.constant 0 : index
    %c0_29 = arith.constant 0 : index
    %60 = vector.load %arg13[%c4, %c0_28, %c0_29] : memref<6x8x128xf32, #tpu.memory_space<vmem>>, vector<1x8x128xf32>
    %61 = vector.shape_cast %60 : vector<1x8x128xf32> to vector<8x128xf32>
    %62 = vector.broadcast %59 : f32 to vector<8x128xf32>
    %63 = arith.mulf %62, %61 : vector<8x128xf32>
    %64 = arith.addf %53, %63 : vector<8x128xf32>
    %c2_i32_30 = arith.constant 2 : i32
    %65 = arith.muli %4, %c2_i32_30 : i32
    %c1_i32_31 = arith.constant 1 : i32
    %66 = arith.addi %65, %c1_i32_31 : i32
    %c3_i32_32 = arith.constant 3 : i32
    %67 = arith.muli %66, %c3_i32_32 : i32
    %c2_i32_33 = arith.constant 2 : i32
    %68 = arith.addi %67, %c2_i32_33 : i32
    %69 = arith.index_cast %68 : i32 to index
    %70 = memref.load %arg6[%69] : memref<24xf32, #tpu.memory_space<smem>>
    %c5 = arith.constant 5 : index
    %c0_34 = arith.constant 0 : index
    %c0_35 = arith.constant 0 : index
    %71 = vector.load %arg13[%c5, %c0_34, %c0_35] : memref<6x8x128xf32, #tpu.memory_space<vmem>>, vector<1x8x128xf32>
    %72 = vector.shape_cast %71 : vector<1x8x128xf32> to vector<8x128xf32>
    %73 = vector.broadcast %70 : f32 to vector<8x128xf32>
    %74 = arith.mulf %73, %72 : vector<8x128xf32>
    %75 = arith.addf %64, %74 : vector<8x128xf32>
    %cst_36 = arith.constant 0.000000e+00 : f32
    %76 = vector.broadcast %cst_36 : f32 to vector<8x128xf32>
    %77 = arith.maximumf %75, %76 : vector<8x128xf32>
    %78 = arith.truncf %77 : vector<8x128xf32> to vector<8x128xbf16>
    %c0_37 = arith.constant 0 : index
    %c0_38 = arith.constant 0 : index
    %c0_39 = arith.constant 0 : index
    %79 = vector.load %arg8[%c0_37, %c0_38, %c0_39] : memref<1x128x128xbf16, #tpu.memory_space<vmem>>, vector<1x128x128xbf16>
    %80 = vector.shape_cast %79 : vector<1x128x128xbf16> to vector<128x128xbf16>
    %c0_40 = arith.constant 0 : index
    %c0_41 = arith.constant 0 : index
    %81 = vector.load %arg12[%c0_40, %c0_41] : memref<8x128xf32, #tpu.memory_space<vmem>>, vector<8x128xf32>
    %cst_42 = arith.constant dense<0.000000e+00> : vector<8x128xf32>
    %82 = tpu.matmul %78, %80, %cst_42 {dimension_numbers = #tpu.dot_dimension_numbers<[1], [0], [0], [1], [0, 0, 1, 1], [], []>} : vector<8x128xbf16>, vector<128x128xbf16>, vector<8x128xf32> -> vector<8x128xf32>
    %83 = arith.addf %81, %82 : vector<8x128xf32>
    %c0_43 = arith.constant 0 : index
    %c0_44 = arith.constant 0 : index
    %84 = vector.load %arg12[%c0_43, %c0_44] : memref<8x128xf32, #tpu.memory_space<vmem>>, vector<8x128xf32>
    tpu.vector_store %arg12[%c0_43, %c0_44], %83 {strides = array<i32>} : memref<8x128xf32, #tpu.memory_space<vmem>>, vector<8x128xf32>,
    %c3_i32_45 = arith.constant 3 : i32
    %85 = arith.cmpi eq, %arg1, %c3_i32_45 : i32
    %86 = arith.extui %85 : i1 to i32
    %c0_i32_46 = arith.constant 0 : i32
    %87 = arith.cmpi ne, %86, %c0_i32_46 : i32
    scf.if %87 {
      %c0_47 = arith.constant 0 : index
      %c0_48 = arith.constant 0 : index
      %88 = vector.load %arg12[%c0_47, %c0_48] : memref<8x128xf32, #tpu.memory_space<vmem>>, vector<8x128xf32>
      %cst_49 = arith.constant 0.000000e+00 : f32
      %89 = vector.broadcast %cst_49 : f32 to vector<8x128xf32>
      %90 = arith.maximumf %88, %89 : vector<8x128xf32>
      %91 = arith.truncf %90 : vector<8x128xf32> to vector<8x128xbf16>
      %c0_50 = arith.constant 0 : index
      %c0_51 = arith.constant 0 : index
      %92 = vector.load %arg10[%c0_50, %c0_51] : memref<128x128xbf16, #tpu.memory_space<vmem>>, vector<128x128xbf16>
      %cst_52 = arith.constant dense<0.000000e+00> : vector<8x128xf32>
      %93 = tpu.matmul %91, %92, %cst_52 {dimension_numbers = #tpu.dot_dimension_numbers<[1], [1], [0], [0], [0, 0, 1, 0], [], []>} : vector<8x128xbf16>, vector<128x128xbf16>, vector<8x128xf32> -> vector<8x128xf32>
      %c0_53 = arith.constant 0 : index
      %c0_54 = arith.constant 0 : index
      %94 = vector.load %arg11[%c0_53, %c0_54] : memref<8x128xf32, #tpu.memory_space<vmem>>, vector<8x128xf32>
      tpu.vector_store %arg11[%c0_53, %c0_54], %93 {strides = array<i32>} : memref<8x128xf32, #tpu.memory_space<vmem>>, vector<8x128xf32>,
    } else {
    }
    return
  }
  func.func @transform_0(%arg0: i32, %arg1: i32) -> (i32, i32) {
    %c0_i32 = arith.constant 0 : i32
    %c0_i32_0 = arith.constant 0 : i32
    return %arg0, %c0_i32 : i32, i32
  }
  func.func @transform_1(%arg0: i32, %arg1: i32) -> (i32, i32) {
    %c0_i32 = arith.constant 0 : i32
    %c0_i32_0 = arith.constant 0 : i32
    return %arg0, %c0_i32 : i32, i32
  }
  func.func @transform_2(%arg0: i32, %arg1: i32) -> i32 {
    %c0_i32 = arith.constant 0 : i32
    %c0_i32_0 = arith.constant 0 : i32
    return %c0_i32 : i32
  }
  func.func @transform_3(%arg0: i32, %arg1: i32) -> i32 {
    %c0_i32 = arith.constant 0 : i32
    %c0_i32_0 = arith.constant 0 : i32
    return %c0_i32 : i32
  }
  func.func @transform_4(%arg0: i32, %arg1: i32) -> i32 {
    %c0_i32 = arith.constant 0 : i32
    %c0_i32_0 = arith.constant 0 : i32
    return %c0_i32 : i32
  }
  func.func @transform_5(%arg0: i32, %arg1: i32) -> i32 {
    %c0_i32 = arith.constant 0 : i32
    %c0_i32_0 = arith.constant 0 : i32
    return %c0_i32 : i32
  }
  func.func @transform_6(%arg0: i32, %arg1: i32) -> (i32, i32, i32) {
    %c0_i32 = arith.constant 0 : i32
    %c0_i32_0 = arith.constant 0 : i32
    %c0_i32_1 = arith.constant 0 : i32
    return %arg1, %c0_i32, %c0_i32_0 : i32, i32, i32
  }
  func.func @transform_7(%arg0: i32, %arg1: i32) -> (i32, i32) {
    %c0_i32 = arith.constant 0 : i32
    %c0_i32_0 = arith.constant 0 : i32
    %c0_i32_1 = arith.constant 0 : i32
    return %c0_i32, %c0_i32_0 : i32, i32
  }
  func.func @transform_8(%arg0: i32, %arg1: i32) -> (i32, i32) {
    %c0_i32 = arith.constant 0 : i32
    %c0_i32_0 = arith.constant 0 : i32
    %c0_i32_1 = arith.constant 0 : i32
    return %c0_i32, %c0_i32_0 : i32, i32
  }
  func.func @transform_9(%arg0: i32, %arg1: i32) -> (i32, i32) {
    %c0_i32 = arith.constant 0 : i32
    %c0_i32_0 = arith.constant 0 : i32
    return %arg0, %c0_i32 : i32, i32
  }
}

</mosaic_0001>

<bundles_post_ra>
// kernel: tpu_custom_call.1
= control target key start
LH: loop header
LB: loop body
LE: loop exit
PB: predicated region body
PF: predicated region fallthrough
CT: control target
= control target key end

     0   :  { %s2417_s0 = inlined_call_operand.hbm [shape: f32[8,128], index: 0, kind: input, shape index: {}]   ;;  %s2418_s1 = inlined_call_operand.hbm [shape: f32[8,128], index: 1, kind: input, shape index: {}]   ;;  %s2419_s2 = inlined_call_operand.vmem [shape: f32[2], index: 2, kind: input, shape index: {}]   ;;  %s2420_s3 = inlined_call_operand.vmem [shape: f32[2], index: 3, kind: input, shape index: {}]   ;;  %s2421_s4 = inlined_call_operand.vmem [shape: f32[24], index: 4, kind: input, shape index: {}]   ;;  %s2422_s5 = inlined_call_operand.vmem [shape: f32[4], index: 5, kind: input, shape index: {}]   ;;  %s2423_s6 = inlined_call_operand.hbm [shape: bf16[4,128,128], index: 6, kind: input, shape index: {}]   ;;  %s2424_s7 = inlined_call_operand.vmem [shape: f32[1,128], index: 7, kind: input, shape index: {}]   ;;  %s2425_s8 = inlined_call_operand.hbm [shape: bf16[128,128], index: 8, kind: input, shape index: {}]   ;;  %s2426_s9 = inlined_call_operand.hbm [shape: f32[8,128], index: 9, kind: output, shape index: {}]  }
   0x1   :  { %2431 = sst [smem:[#allocation27_spill]] %s2417_s0 }
   0x2   :  { %2432 = sst [smem:[#allocation28_spill]] %s2420_s3 }
   0x3   :  { %14 = vsyncpa [#allocation5], 0 }
   0x4   :  { %15 = vsyncpa [#allocation9], 0 }
   0x5   :  { %16 = vsyncpa [#allocation7], 0 }
   0x6   :  { %17 = vsyncpa [#allocation12], 0 }
   0x7   :  { %18 = vsyncpa [#allocation15], 0 }
   0x8   :  { %19 = vsyncpa [#allocation6], 0  ;;  %s2058_s30 = smov 0   ;;  %s2060_s10 = smov 0  }
   0x9   :  { %s2062_s11 = smov 0   ;;  %s2064_s12 = smov 0  }
   0xa   :  { %s2066_s13 = smov 0   ;;  %s2068_s14 = smov 0  }
   0xb LB: > { %s2089_s15 = sadd.s32 4294967295, %s1988_s14   ;;  %p1356_p0 = scmp.ge.s32.totalorder %s1988_s14, 1  ;;  %s1988_s14 = sphi %s2068_s14, %s25_s14   ;;  %s1984_s13 = sphi %s2066_s13, %s2462_s13   ;;  %s1980_s12 = sphi %s2064_s12, %s2461_s12   ;;  %s1976_s11 = sphi %s2062_s11, %s2460_s11   ;;  %s1972_s10 = sphi %s2060_s10, %s2459_s10   ;;  %s1968_s30 = sphi %s2058_s30, %s2458_s30  }
   0xc   : > { %p2427_p1 = scmp.eq.s32.totalorder %s2089_s15, 0  ;;  %p272_p2 = scmp.lt.s32.totalorder %s1988_s14, 5 }
   0xd   : > { %s1990_s17 = smov [#allocation4]   ;;  %s1991_s19 = smov [#allocation8]  }
   0xe   : > { %p2094_p3 = pnand %p1356_p0, %p272_p2  ;;  %s287_s18 = sshll.u32 %s1990_s17, 4  ;;  %s288_s18 = int_to_ptr.vmem [resolvable:$true] %s287_s18 }
   0xf   : > { %s300_s20 = sshll.u32 %s1991_s19, 4  ;;  %s2434_s3 = sld [smem:[#allocation28_spill]]  ;;  %s2109_s20 = int_to_ptr.vmem [resolvable:$true] %s300_s20 }
  0x10   : > { %s2433_s16 = scalar_select %p2094_p3, 1, 0 }
  0x11   : > { %p1586_p4 = pneg %p2094_p3  ;;  %s2436_s0 = sld [smem:[#allocation27_spill]] }
  0x13   : > { %p2105_p5 = pnand %p1586_p4, %p2427_p1 }
  0x15   : > { %s322_s23 = sshll.u32 %s2434_s3, 4  ;;  %p2124_p7 = pneg %p2105_p5  ;;  %s2111_s23 = int_to_ptr.vmem [resolvable:$true] %s322_s23 }
  0x17   : > { %s1710_s17 = scalar_lea.hbm %s2436_s0, 128 }
  0x18   : > { %p1711_p6 = scmp.ne.s32.totalorder %s2436_s0, %s1710_s17  ;;  %p1717_p10 = scmp.lt.u32.totalorder %s1710_s17, %s2436_s0 }
  0x1a   : > { %p1713_p8 = pnand %p2124_p7, %p1711_p6 }
  0x1c   : > { %p1714_p9 = pneg %p1713_p8 }
  0x1e   : > { %p1719_p11 = pnand %p1717_p10, %p1714_p9 }
  0x20   : > { %1722 = shalt.err (!%p1719_p11)
}
  0x21   : > { %s1723_s26 = scalar_lea.vmem %s288_s18, 128  ;;  %p1731_p2 = scmp.lt.s32.totalorder %s288_s18, %s288_s18 }
  0x22   : > { %p1724_p12 = scmp.ne.s32.totalorder %s288_s18, %s1723_s26  ;;  %p1732_p4 = scmp.lt.s32.totalorder %s1723_s26, %s1723_s26 }
  0x24   : > { %p1726_p13 = pnand %p1724_p12, %p2124_p7  ;;  %p1733_p1 = por %p1732_p4, %p1731_p2 }
  0x26   : > { %p1727_p0 = pneg %p1726_p13 }
  0x28   : > { %p1734_p3 = pnand %p1733_p1, %p1727_p0 }
  0x2a   : > { %1737 = shalt.err (!%p1734_p3)
}
  0x2b   : > { %1589 = dma.hbm_to_vmem [thread:$0]  (!%p2105_p5), %s2436_s0, 128, %s288_s18, [#allocation5]  }
  0x2c   : > { %s1738_s19 = scalar_lea.hbm %s2418_s1, 128 }
  0x2d   : > { %p1739_p6 = scmp.ne.s32.totalorder %s2418_s1, %s1738_s19  ;;  %p1745_p1 = scmp.lt.u32.totalorder %s1738_s19, %s2418_s1 }
  0x2f   : > { %p1741_p8 = pnand %p1739_p6, %p2124_p7 }
  0x31   : > { %p1742_p9 = pneg %p1741_p8 }
  0x33   : > { %p1747_p3 = pnand %p1745_p1, %p1742_p9 }
  0x35   : > { %1750 = shalt.err (!%p1747_p3)
}
  0x36   : > { %s1751_s18 = scalar_lea.vmem %s2109_s20, 128  ;;  %p1759_p13 = scmp.lt.s32.totalorder %s2109_s20, %s2109_s20 }
  0x37   : > { %p1752_p10 = scmp.ne.s32.totalorder %s2109_s20, %s1751_s18  ;;  %p1760_p0 = scmp.lt.s32.totalorder %s1751_s18, %s1751_s18 }
  0x39   : > { %p1754_p11 = pnand %p1752_p10, %p2124_p7  ;;  %p1761_p2 = por %p1760_p0, %p1759_p13 }
  0x3b   : > { %p1755_p12 = pneg %p1754_p11 }
  0x3d   : > { %p1762_p4 = pnand %p1761_p2, %p1755_p12 }
  0x3f   : > { %1765 = shalt.err (!%p1762_p4)
}
  0x40   : > { %1592 = dma.hbm_to_vmem [thread:$0]  (!%p2105_p5), %s2418_s1, 128, %s2109_s20, [#allocation9]  }
  0x41   : > { %s1766_s29 = scalar_lea.vmem %s2111_s23, 16  ;;  %p1774_p1 = scmp.lt.s32.totalorder %s2111_s23, %s2111_s23 }
  0x42   : > { %p1767_p6 = scmp.ne.s32.totalorder %s2111_s23, %s1766_s29  ;;  %p1775_p3 = scmp.lt.s32.totalorder %s1766_s29, %s1766_s29 }
  0x44   : > { %p1769_p8 = pnand %p1767_p6, %p2124_p7  ;;  %p1776_p10 = por %p1775_p3, %p1774_p1 }
  0x46   : > { %p1770_p9 = pneg %p1769_p8 }
  0x48   : > { %p1777_p11 = pnand %p1776_p10, %p1770_p9 }
  0x4a   : > { %1780 = shalt.err (!%p1777_p11)
}
  0x4b   : > { %s1992_s3 = smov [#allocation11]   ;;  %s2438_s20 = sshll.u32 %s2419_s2, 4  ;;  %s312_s20 = int_to_ptr.vmem [resolvable:$true] %s2438_s20 }
  0x4c   : > { %1598 = dma.vmem_to_smem (!%p2105_p5), %s2111_s23, 16, %s1992_s3, [#allocation12]  }
  0x4d   : > { %s1781_s21 = scalar_lea.vmem %s312_s20, 16  ;;  %p1789_p2 = scmp.lt.s32.totalorder %s312_s20, %s312_s20 }
  0x4e   : > { %p1782_p12 = scmp.ne.s32.totalorder %s312_s20, %s1781_s21  ;;  %p1790_p4 = scmp.lt.s32.totalorder %s1781_s21, %s1781_s21 }
  0x50   : > { %p1784_p13 = pnand %p1782_p12, %p2124_p7  ;;  %p1791_p6 = por %p1790_p4, %p1789_p2 }
  0x52   : > { %p1785_p0 = pneg %p1784_p13 }
  0x54   : > { %p1792_p8 = pnand %p1791_p6, %p1785_p0 }
  0x56   : > { %1795 = shalt.err (!%p1792_p8)
}
  0x57   : > { %s1993_s25 = smov [#allocation10]   ;;  %s333_s18 = sshll.u32 %s2421_s4, 4  ;;  %s334_s18 = int_to_ptr.vmem [resolvable:$true] %s333_s18 }
  0x58   : > { %1595 = dma.vmem_to_smem (!%p2105_p5), %s312_s20, 16, %s1993_s25, [#allocation7]  }
  0x59   : > { %s344_s29 = sshll.u32 %s2422_s5, 4  ;;  %s1796_s3 = scalar_lea.vmem %s334_s18, 16  ;;  %s345_s29 = int_to_ptr.vmem [resolvable:$true] %s344_s29 }
  0x5a   : > { %p1797_p9 = scmp.ne.s32.totalorder %s334_s18, %s1796_s3  ;;  %p1804_p10 = scmp.lt.s32.totalorder %s334_s18, %s334_s18 }
  0x5b   : > { %p1805_p11 = scmp.lt.s32.totalorder %s1796_s3, %s1796_s3 }
  0x5c   : > { %p1799_p1 = pnand %p1797_p9, %p2124_p7 }
  0x5d   : > { %p1806_p12 = por %p1805_p11, %p1804_p10 }
  0x5e   : > { %p1800_p3 = pneg %p1799_p1 }
  0x60   : > { %p1807_p13 = pnand %p1806_p12, %p1800_p3 }
  0x62   : > { %1810 = shalt.err (!%p1807_p13)
}
  0x63   : > { %s1994_s17 = smov [#allocation13]   ;;  %s1811_s19 = scalar_lea.vmem %s345_s29, 16 }
  0x64   : > { %1601 = dma.vmem_to_smem (!%p2105_p5), %s334_s18, 16, %s1994_s17, [#allocation12]  }
  0x65   : > { %p1812_p0 = scmp.ne.s32.totalorder %s345_s29, %s1811_s19  ;;  %p1819_p6 = scmp.lt.s32.totalorder %s345_s29, %s345_s29 }
  0x66   : > { %p1820_p8 = scmp.lt.s32.totalorder %s1811_s19, %s1811_s19 }
  0x67   : > { %p1814_p2 = pnand %p1812_p0, %p2124_p7 }
  0x68   : > { %p1821_p9 = por %p1820_p8, %p1819_p6 }
  0x69   : > { %p1815_p4 = pneg %p1814_p2 }
  0x6b   : > { %p1822_p1 = pnand %p1821_p9, %p1815_p4 }
  0x6d   : > { %1825 = shalt.err (!%p1822_p1)
}
  0x6e   : > { %s1995_s20 = smov [#allocation14]   ;;  %s1996_s21 = smov [#allocation17]  }
  0x6f   : > { %1604 = dma.vmem_to_smem (!%p2105_p5), %s345_s29, 16, %s1995_s20, [#allocation15]  }
  0x70   : > { %s357_s25 = sshll.u32 %s1996_s21, 4  ;;  %s1826_s18 = scalar_lea.hbm %s2425_s8, 1024  ;;  %s358_s25 = int_to_ptr.vmem [resolvable:$true] %s357_s25 }
  0x71   : > { %p1827_p3 = scmp.ne.s32.totalorder %s2425_s8, %s1826_s18  ;;  %p1833_p12 = scmp.lt.u32.totalorder %s1826_s18, %s2425_s8 }
  0x73   : > { %p1829_p10 = pnand %p1827_p3, %p2124_p7 }
  0x75   : > { %p1830_p11 = pneg %p1829_p10 }
  0x77   : > { %p1835_p13 = pnand %p1833_p12, %p1830_p11 }
  0x79   : > { %1838 = shalt.err (!%p1835_p13)
}
  0x7a   : > { %s1839_s29 = scalar_lea.vmem %s358_s25, 1024  ;;  %p1847_p6 = scmp.lt.s32.totalorder %s358_s25, %s358_s25 }
  0x7b   : > { %p1840_p0 = scmp.ne.s32.totalorder %s358_s25, %s1839_s29  ;;  %p1848_p8 = scmp.lt.s32.totalorder %s1839_s29, %s1839_s29 }
  0x7d   : > { %p1842_p2 = pnand %p1840_p0, %p2124_p7  ;;  %p1849_p9 = por %p1848_p8, %p1847_p6 }
  0x7f   : > { %p1843_p4 = pneg %p1842_p2 }
  0x81   : > { %p1850_p1 = pnand %p1849_p9, %p1843_p4 }
  0x83   : > { %1853 = shalt.err (!%p1850_p1)
}
  0x84   : > { %s2429_s19 = smov 64   ;;  %s2430_s22 = smov 4  }
  0x85   : > { %1607 = dma.hbm_to_vmem [thread:$0]  (!%p2105_p5), %s2425_s8, 1024, %s358_s25, [#allocation9], %s2429_s19, %s2429_s19, %s2430_s22  }
  0x86   : > { %s34_s23 = sadd.s32 1, %s1984_s13  ;;  %s180_s26 = sadd.s32 1, %s1976_s11 }
  0x87   : > { %p35_p7 = scmp.ge.s32.totalorder %s34_s23, 4  ;;  %p187_p3 = scmp.ne.s32.totalorder %s1976_s11, %s1972_s10 }
  0x88   : > { %p188_p10 = scmp.eq.s32.totalorder %s1988_s14, 0  ;;  %p193_p12 = scmp.ne.s32.totalorder %s1972_s10, %s1968_s30 }
  0x89   : > { %s2464_s23 = smov (%p35_p7, %s34_s23), 0  ;;  %p1619_p13 = scmp.lt.s32.totalorder %s1988_s14, 4 }
  0x8a   : > { %p2222_p11 = por %p188_p10, %p187_p3  ;;  %s177_s24 = ssub.s32 %s1984_s13, %s2464_s23 }
  0x8b   : > { %p178_p0 = scmp.eq.s32.totalorder %s177_s24, 0  ;;  %p2440_p2 = scmp.eq.s32.totalorder %s2089_s15, 0 }
  0x8c   : > { %s371_s27 = sand.u32 1, %s1988_s14   ;;  %s373_s28 = sand.u32 1, %s1976_s11  }
  0x8d   : > { %p2233_p5 = por %p2440_p2, %p193_p12  ;;  %s1365_s17 = sshll.u32 %s373_s28, 6 }
  0x8e   : > { %s2240_s3 = scalar_select %p178_p0, %s1976_s11, %s180_s26  }
  0x8f   : > { %s1427_s29 = sshll.u32 %s1984_s13, 10  ;;  %s375_s30 = scalar_lea.vmem [#allocation16], %s1365_s17 }
  0x90   : > { %s2246_s19 = scalar_lea.hbm %s2423_s6, %s1427_s29  ;;  %s382_s24 = sshll.u32 %s375_s30, 4  ;;  %s2248_s24 = int_to_ptr.vmem [resolvable:$true] %s382_s24 }
  0x91   : > { %p2252_p4 = pnand %p1619_p13, %p2222_p11  ;;  %s2256_s26 = scalar_lea.sflag [#allocation5], %s371_s27 }
  0x92   : > { %s1854_s28 = scalar_lea.hbm %s2246_s19, 1024  ;;  %s1859_s18 = scalar_lea.hbm %s2423_s6, 4096 }
  0x93   : > { %p1855_p6 = scmp.ne.s32.totalorder %s2246_s19, %s1854_s28  ;;  %p1856_p8 = pneg %p2252_p4 }
  0x94   : > { %p1860_p7 = scmp.lt.u32.totalorder %s2246_s19, %s2423_s6  ;;  %p1861_p3 = scmp.lt.u32.totalorder %s1859_s18, %s1854_s28 }
  0x95   : > { %p1857_p9 = pnand %p1856_p8, %p1855_p6  ;;  %p1863_p11 = scmp.lt.u32.totalorder %s1854_s28, %s2246_s19 }
  0x96   : > { %p1862_p10 = por %p1861_p3, %p1860_p7 }
  0x97   : > { %p1858_p1 = pneg %p1857_p9 }
  0x98   : > { %p1864_p12 = por %p1863_p11, %p1862_p10 }
  0x9a   : > { %p1865_p13 = pnand %p1864_p12, %p1858_p1 }
  0x9c   : > { %1868 = shalt.err (!%p1865_p13)
}
  0x9d   : > { %s1869_s27 = scalar_lea.vmem %s2248_s24, 1024  ;;  %s1999_s30 = smov [#allocation16]  }
  0x9e   : > { %p1870_p0 = scmp.ne.s32.totalorder %s2248_s24, %s1869_s27  ;;  %s1874_s17 = sshll.u32 %s1999_s30, 4  ;;  %s1875_s17 = int_to_ptr.vmem [resolvable:$false] %s1874_s17 }
  0x9f   : > { %s1876_s29 = scalar_lea.vmem %s1875_s17, 2048  ;;  %p1877_p9 = scmp.lt.s32.totalorder %s2248_s24, %s1875_s17 }
  0xa0   : > { %p1872_p2 = pnand %p1870_p0, %p1856_p8  ;;  %p1878_p7 = scmp.lt.s32.totalorder %s1876_s29, %s1869_s27 }
  0xa2   : > { %p1873_p6 = pneg %p1872_p2  ;;  %p1879_p3 = por %p1878_p7, %p1877_p9 }
  0xa4   : > { %p1880_p10 = pnand %p1879_p3, %p1873_p6 }
  0xa6   : > { %1883 = shalt.err (!%p1880_p10)
}
  0xa7   : > { %s2443_s28 = smov 4   ;;  %s2444_s18 = smov 64  }
  0xa8   : > { %1611 = dma.hbm_to_vmem [thread:$0]  (!%p2252_p4), %s2246_s19, 1024, %s2248_s24, %s2256_s26, %s2444_s18, %s2444_s18, %s2443_s28  }
  0xa9   : > { %p2445_p8 = scmp.ne.s32.totalorder %s2433_s16, 0 }
  0xaa   : > { %p2446_p1 = scmp.eq.s32.totalorder (!%p2445_p8), %s2089_s15, 0 }
  0xab   : > { %394 = sbr.rel (%p2445_p8) target bundleno = 946 (0x3b2), region = 56 }
  0xb2   : > { %1935 = dma.done.wait (%p2446_p1), [#allocation5], 128   ;;  %p2447_p11 = pmov %p2446_p1 }
  0xb3   : > { %p2448_p12 = pmov %p2446_p1 }
  0xb4   : > { %1937 = vsyncadd (%p2447_p11), [#allocation5], 4294967168 }
  0xb5   : > { %1939 = dma.done.wait (%p2448_p12), [#allocation9], 128   ;;  %p2449_p13 = pmov %p2446_p1 }
  0xb6   : > { %p2450_p0 = pmov %p2446_p1 }
  0xb7   : > { %1941 = vsyncadd (%p2449_p13), [#allocation9], 4294967168 }
  0xb8   : > { %1943 = dma.done.wait (%p2450_p0), [#allocation7], 16   ;;  %p2451_p4 = pmov %p2450_p0 }
  0xb9   : > { %p2452_p2 = pmov %p2450_p0 }
  0xba   : > { %1945 = vsyncadd (%p2451_p4), [#allocation7], 4294967280 }
  0xbb   : > { %1947 = dma.done.wait (%p2452_p2), [#allocation12], 32   ;;  %p2453_p6 = pmov %p2450_p0 }
  0xbc   : > { %p2454_p9 = pmov %p2450_p0 }
  0xbd   : > { %1949 = vsyncadd (%p2453_p6), [#allocation12], 4294967264 }
  0xbe   : > { %1951 = dma.done.wait (%p2454_p9), [#allocation15], 16   ;;  %p2455_p7 = pmov %p2450_p0 }
  0xbf   : > { %s420_s16 = sand.u32 1, %s2089_s15   ;;  %s422_s19 = sand.u32 1, %s1972_s10  }
  0xc0   : > { %1953 = vsyncadd (%p2455_p7), [#allocation15], 4294967280  ;;  %s1375_s22 = sshll.u32 %s422_s19, 6  ;;  %s421_s24 = scalar_lea.sflag [#allocation5], %s420_s16 }
  0xc1   : > { %s2311_s26 = scalar_lea.vmem [#allocation16], %s1375_s22 }
  0xc2   : > { %1955 = dma.done.wait (%p2233_p5), %s421_s24, 1024  }
  0xc3   : > { %1957 = vsyncadd (%p2233_p5), %s421_s24, 4294966272  ;;  %p2456_p3 = pmov %p2450_p0 }
  0xc4   : > { %p2457_p10 = pmov %p2450_p0 }
  0xc5   : > { %1959 = dma.done.wait (%p2456_p3), [#allocation9], 1024  }
  0xc6   : > { %1961 = vsyncadd (%p2457_p10), [#allocation9], 4294966272 }
  0xc7   : > { %433 = sfence }
  0xc8   : > { %p1377_p8 = scmp.ne.s32.totalorder %s1980_s12, 0 }
  0xc9   : > { %v480_v0 = vlaneseq (!%p1377_p8)  ;;  %v2000_v1 = vmov (!%p1377_p8), 0.0   ;;  %s465_s20 = sld [smem:[#allocation10]] (!%p1377_p8)  ;;  %vm2001_vm0 = vmmov (!%p1377_p8), 0   ;;  %s1378_s25 = sld [smem:[#allocation10 + $0x1]] (!%p1377_p8)  ;;  %v464_v8 = vld [vmem:[#allocation4] sm:$0xff] (!%p1377_p8)  ;;  %v472_v9 = vld [vmem:[#allocation8] sm:$0xff] (!%p1377_p8) }
  0xca   : > { %463 = sbr.rel (%p1377_p8) target bundleno = 447 (0x1bf), region = 92  ;;  %1464 = vmatprep.subr.bf16.mxu0 (!%p1377_p8), %v2000_v1  ;;  %1472 = vmatprep.subr.bf16.mxu1 (!%p1377_p8), %v2000_v1  ;;  %s2324_s21 = sld [smem:[#allocation11]] (!%p1377_p8)  ;;  %v2002_v12 = vmov (!%p1377_p8), 1.0|1.0   ;;  %v1404_v22 = vld [vmem:[%s2424_s7] ss:$0 sm:$0xff] (!%p1377_p8) }
  0xcb   : > { %v481_v2 = vshrl.u32 (!%p1377_p8), %v480_v0, 7  ;;  %v498_v3 = vand.u32 (!%p1377_p8), 127, %v480_v0  ;;  %1468 = vmatprep.mubr.msk.bf16.mxu0 (!%p1377_p8), %vm2001_vm0, %v2000_v1  ;;  %1476 = vmatprep.mubr.msk.bf16.mxu1 (!%p1377_p8), %vm2001_vm0, %v2000_v1  ;;  %s1379_s27 = sld [smem:[#allocation11 + $0x1]] (!%p1377_p8)  ;;  %944 = vst [vmem:[#allocation2] sm:$0xff] (!%p1377_p8), %v1404_v22 }
  0xcd   : > { %v482_v4 = vadd.s32 (!%p1377_p8), 8, %v481_v2  ;;  %v515_v5 = vadd.s32 (!%p1377_p8), 4294967295, %v498_v3  ;;  %v483_v6 = vadd.s32 (!%p1377_p8), 16, %v481_v2  ;;  %v484_v7 = vadd.s32 (!%p1377_p8), 24, %v481_v2 }
  0xce   : > { %vm655_vm7 = vcmp.eq.s32.totalorder (!%p1377_p8), %v481_v2, %v498_v3  ;;  %v795_v21 = vadd.s32 (!%p1377_p8), 1, %v498_v3 }
  0xcf   : > { %vm516_vm1 = vcmp.eq.s32.totalorder (!%p1377_p8), %v481_v2, %v515_v5  ;;  %vm517_vm2 = vcmp.eq.s32.totalorder (!%p1377_p8), %v482_v4, %v515_v5  ;;  %vm518_vm3 = vcmp.eq.s32.totalorder (!%p1377_p8), %v483_v6, %v515_v5  ;;  %vm519_vm4 = vcmp.eq.s32.totalorder (!%p1377_p8), %v484_v7, %v515_v5 }
  0xd0   : > { %vm1380_vm5 = vmpackc.low (!%p1377_p8), %vm517_vm2, %vm516_vm1  ;;  %v466_v10 = vstv (!%p1377_p8), %s465_s20  ;;  %v469_v11 = vstv (!%p1377_p8), %s2324_s21  ;;  %v474_v14 = vstv (!%p1377_p8), %s1378_s25  ;;  %vm656_vm8 = vcmp.eq.s32.totalorder (!%p1377_p8), %v482_v4, %v498_v3 }
  0xd1   : > { %1465 = vmatpush3.bf16.msk.msra.mxu0 %vm1380_vm5, %v2002_v12  ;;  %1473 = vmatpush3.bf16.msk.msra.mxu1 %vm1380_vm5, %v2002_v12  ;;  %v467_v13 = vmul.f32 %v466_v10, %v464_v8  ;;  %v477_v15 = vstv %s1379_s27  ;;  %vm1382_vm6 = vmpackc.low %vm519_vm4, %vm518_vm3  ;;  %v475_v16 = vmul.f32 %v474_v14, %v472_v9  ;;  %vm657_vm10 = vcmp.eq.s32.totalorder %v483_v6, %v498_v3 }
  0xd2   : > { %1466 = vmatprep.subr.bf16.mxu0 %v2000_v1  ;;  %1474 = vmatprep.subr.bf16.mxu1 %v2000_v1  ;;  %vm1388_vm9 = vmpackc.low %vm656_vm8, %vm655_vm7  ;;  %vm658_vm11 = vcmp.eq.s32.totalorder %v484_v7, %v498_v3  ;;  %vm796_vm13 = vcmp.eq.s32.totalorder %v481_v2, %v795_v21  ;;  %vm797_vm14 = vcmp.eq.s32.totalorder %v482_v4, %v795_v21 }
  0xd3   : > { %v470_v17 = vadd.f32 %v469_v11, %v467_v13  ;;  %v478_v18 = vadd.f32 %v477_v15, %v475_v16  ;;  %vm1390_vm12 = vmpackc.low %vm658_vm11, %vm657_vm10  ;;  %vm798_vm1 = vcmp.eq.s32.totalorder %v483_v6, %v795_v21  ;;  %vm799_vm2 = vcmp.eq.s32.totalorder %v484_v7, %v795_v21 }
  0xd4   : > { %vm1396_vm15 = vmpackc.low %vm797_vm14, %vm796_vm13 }
  0xd5   : > { %1467 = vmatpush3.bf16.msk.msra.mxu0 %vm1382_vm6, %v2002_v12  ;;  %1475 = vmatpush3.bf16.msk.msra.mxu1 %vm1382_vm6, %v2002_v12  ;;  %v471_v19 = vpack.c.bf16 %v470_v17, %v470_v17  ;;  %v479_v20 = vpack.c.bf16 %v478_v18, %v478_v18  ;;  %vm1398_vm3 = vmpackc.low %vm799_vm2, %vm798_vm1 }
  0xd6   : > { %1480 = vmatprep.subr.bf16.mxu0 %v2000_v1  ;;  %1488 = vmatprep.subr.bf16.mxu1 %v2000_v1 }
  0xd8   : > { %1469 = vmatmul.mubr.bf16.vlgmr.msra.gmra.mrb[0].mxu0 %v471_v19  ;;  %1477 = vmatmul.mubr.bf16.vlgmr.msra.gmra.mrb[0].mxu1 %v479_v20 }
  0xd9   : > { %1481 = vmatpush3.bf16.msk.msra.mxu0 %vm1388_vm9, %v2002_v12  ;;  %1489 = vmatpush3.bf16.msk.msra.mxu1 %vm1388_vm9, %v2002_v12 }
  0xda   : > { %1482 = vmatprep.subr.bf16.mxu0 %v2000_v1  ;;  %1490 = vmatprep.subr.bf16.mxu1 %v2000_v1 }
  0xdb   : > { %1484 = vmatprep.mubr.msk.bf16.mxu0 %vm2001_vm0, %v2000_v1  ;;  %1492 = vmatprep.mubr.msk.bf16.mxu1 %vm2001_vm0, %v2000_v1 }
  0xdd   : > { %1483 = vmatpush3.bf16.msk.msra.mxu0 %vm1390_vm12, %v2002_v12  ;;  %1491 = vmatpush3.bf16.msk.msra.mxu1 %vm1390_vm12, %v2002_v12 }
  0xde   : > { %1496 = vmatprep.subr.bf16.mxu0 %v2000_v1  ;;  %1504 = vmatprep.subr.bf16.mxu1 %v2000_v1 }
  0xe0   : > { %1485 = vmatmul.mubr.bf16.vlgmr.msra.gmra.mrb[4].mxu0 %v471_v19  ;;  %1493 = vmatmul.mubr.bf16.vlgmr.msra.gmra.mrb[4].mxu1 %v479_v20 }
  0xe1   : > { %1497 = vmatpush3.bf16.msk.msra.mxu0 %vm1396_vm15, %v2002_v12  ;;  %1505 = vmatpush3.bf16.msk.msra.mxu1 %vm1396_vm15, %v2002_v12 }
  0xe2   : > { %1498 = vmatprep.subr.bf16.mxu0 %v2000_v1  ;;  %1506 = vmatprep.subr.bf16.mxu1 %v2000_v1 }
  0xe3   : > { %1500 = vmatprep.mubr.msk.bf16.mxu0 %vm2001_vm0, %v2000_v1  ;;  %1508 = vmatprep.mubr.msk.bf16.mxu1 %vm2001_vm0, %v2000_v1 }
  0xe5   : > { %1499 = vmatpush3.bf16.msk.msra.mxu0 %vm1398_vm3, %v2002_v12  ;;  %1507 = vmatpush3.bf16.msk.msra.mxu1 %vm1398_vm3, %v2002_v12 }
  0xe8   : > { %1501 = vmatmul.mubr.bf16.vlgmr.msra.gmra.mrb[8].mxu0 %v471_v19  ;;  %1509 = vmatmul.mubr.bf16.vlgmr.msra.gmra.mrb[8].mxu1 %v479_v20 }
 0x1ab   : > { %v606_v23 = vpop.f32.mrb[0].mxu0  ;;  %v647_v24 = vpop.f32.mrb[0].mxu1 }
 0x1ac   : > { %612 = vst [vmem:[#allocation3] sm:$0xff] %v606_v23  ;;  %654 = vst [vmem:[#allocation3 + $0x18] sm:$0xff] %v647_v24  ;;  %v1470_v25 = vpop.f32.mrb[1].mxu0  ;;  %v1478_v26 = vpop.f32.mrb[1].mxu1 }
 0x1ad   : > { %v609_v27 = vpop.f32.mrb[2].mxu0  ;;  %v650_v28 = vpop.f32.mrb[2].mxu1 }
 0x1ae   : > { %v1471_v29 = vpop.f32.mrb[3].mxu0  ;;  %v1479_v30 = vpop.f32.mrb[3].mxu1 }
 0x1b3   : > { %v745_v31 = vpop.f32.mrb[4].mxu0  ;;  %v787_v32 = vpop.f32.mrb[4].mxu1 }
 0x1b4   : > { %752 = vst [vmem:[#allocation3 + $0x8] sm:$0xff] %v745_v31  ;;  %794 = vst [vmem:[#allocation3 + $0x20] sm:$0xff] %v787_v32  ;;  %v1486_v33 = vpop.f32.mrb[5].mxu0  ;;  %v1494_v34 = vpop.f32.mrb[5].mxu1 }
 0x1b5   : > { %v748_v35 = vpop.f32.mrb[6].mxu0  ;;  %v790_v36 = vpop.f32.mrb[6].mxu1 }
 0x1b6   : > { %v1487_v37 = vpop.f32.mrb[7].mxu0  ;;  %v1495_v38 = vpop.f32.mrb[7].mxu1 }
 0x1bb   : > { %v886_v39 = vpop.f32.mrb[8].mxu0  ;;  %v928_v40 = vpop.f32.mrb[8].mxu1 }
 0x1bc   : > { %893 = vst [vmem:[#allocation3 + $0x10] sm:$0xff] %v886_v39  ;;  %935 = vst [vmem:[#allocation3 + $0x28] sm:$0xff] %v928_v40  ;;  %v1502_v41 = vpop.f32.mrb[9].mxu0  ;;  %v1510_v42 = vpop.f32.mrb[9].mxu1 }
 0x1bd   : > { %v889_v43 = vpop.f32.mrb[10].mxu0  ;;  %v931_v44 = vpop.f32.mrb[10].mxu1 }
 0x1be   : > { %v1503_v45 = vpop.f32.mrb[11].mxu0  ;;  %v1511_v46 = vpop.f32.mrb[11].mxu1 }
 0x1bf PF: > { %v1694_v47 = vld [vmem:[%s2311_s26] sm:$0xff]   ;;  %v2003_v48 = vmov 0.0   ;;  %v1695_v49 = vld [vmem:[%s2311_s26 + $0x8] sm:$0xff]   ;;  %vm2004_vm0 = vmmov 0   ;;  %s2358_s29 = sld [smem:[#allocation14 + %s1980_s12]]  ;;  %s948_s28 = smul.u32 6, %s1980_s12 }
 0x1c0   : > { %1512 = vmatprep.subr.bf16.mxu0 %v2003_v48  ;;  %1528 = vmatprep.mubr.msk.bf16.mxu0 %vm2004_vm0, %v2003_v48  ;;  %s1405_s16 = sshll.u32 %s1980_s12, 1  ;;  %v1696_v50 = vld [vmem:[%s2311_s26 + $0x10] sm:$0xff]   ;;  %v950_v51 = vld [vmem:[#allocation3] sm:$0xff]  ;;  %v1697_v52 = vld [vmem:[%s2311_s26 + $0x18] sm:$0xff]   ;;  %p1414_p5 = scmp.ne.s32.totalorder %s1980_s12, 3 }
 0x1c1   : > { %1513 = vmatpush3.bf16.msra.mxu0 %v1694_v47  ;;  %s949_s18 = sld [smem:[#allocation13 + %s948_s28]]  ;;  %s954_s19 = sadd.s32 1, %s948_s28  ;;  %v957_v55 = vld [vmem:[#allocation3 + $0x8] sm:$0xff]  ;;  %v1698_v59 = vld [vmem:[%s2311_s26 + $0x20] sm:$0xff]   ;;  %v973_v63 = vld [vmem:[#allocation3 + $0x18] sm:$0xff]  ;;  %v2005_v26 = vmov (!%p1414_p5), 0.0  }
 0x1c2   : > { %1514 = vmatprep.subr.bf16.mxu0 %v2003_v48  ;;  %s955_s22 = sld [smem:[#allocation13 + %s954_s19]]  ;;  %s961_s24 = sadd.s32 2, %s948_s28  ;;  %v980_v2 = vld [vmem:[#allocation3 + $0x20] sm:$0xff]  ;;  %v1699_v5 = vld [vmem:[%s2311_s26 + $0x28] sm:$0xff]   ;;  %v1700_v13 = vld [vmem:[%s2311_s26 + $0x30] sm:$0xff]   ;;  %vm2006_vm4 = vmmov (!%p1414_p5), 0  }
 0x1c3   : > { %s969_s20 = sadd.s32 1, %s1405_s16  ;;  %s962_s21 = sld [smem:[#allocation13 + %s961_s24]]  ;;  %v964_v58 = vld [vmem:[#allocation3 + $0x10] sm:$0xff]  ;;  %v987_v4 = vld [vmem:[#allocation3 + $0x28] sm:$0xff]  ;;  %v1701_v16 = vld [vmem:[%s2311_s26 + $0x38] sm:$0xff]  }
 0x1c4   : > { %s970_s25 = smul.u32 3, %s969_s20  ;;  %v1009_v19 = vld [vmem:[#allocation2] sm:$0xff]  ;;  %v1702_v25 = vld [vmem:[#allocation17] sm:$0xff] (!%p1414_p5)   ;;  %v1703_v27 = vld [vmem:[#allocation17 + $0x8] sm:$0xff] (!%p1414_p5)  }
 0x1c5   : > { %1515 = vmatpush3.bf16.msra.mxu0 %v1695_v49  ;;  %v946_v53 = vstv %s2358_s29  ;;  %v1704_v28 = vld [vmem:[#allocation17 + $0x10] sm:$0xff] (!%p1414_p5)   ;;  %v1705_v29 = vld [vmem:[#allocation17 + $0x18] sm:$0xff] (!%p1414_p5)   ;;  %v1706_v30 = vld [vmem:[#allocation17 + $0x20] sm:$0xff] (!%p1414_p5)  }
 0x1c6   : > { %1516 = vmatprep.subr.bf16.mxu0 %v2003_v48  ;;  %s971_s27 = sld [smem:[#allocation13 + %s970_s25]]  ;;  %s977_s30 = sadd.s32 1, %s970_s25  ;;  %v1707_v31 = vld [vmem:[#allocation17 + $0x28] sm:$0xff] (!%p1414_p5)   ;;  %v1708_v32 = vld [vmem:[#allocation17 + $0x30] sm:$0xff] (!%p1414_p5)   ;;  %v1709_v33 = vld [vmem:[#allocation17 + $0x38] sm:$0xff] (!%p1414_p5)  }
 0x1c7   : > { %v951_v54 = vstv %s949_s18  ;;  %s978_s17 = sld [smem:[#allocation13 + %s977_s30]]  ;;  %s984_s0 = sadd.s32 2, %s970_s25 }
 0x1c8   : > { %v952_v56 = vmul.f32 %v951_v54, %v950_v51  ;;  %v958_v57 = vstv %s955_s22  ;;  %s985_s28 = sld [smem:[#allocation13 + %s984_s0]] }
 0x1c9   : > { %1517 = vmatpush3.bf16.msra.mxu0 %v1696_v50  ;;  %v959_v61 = vmul.f32 %v958_v57, %v957_v55  ;;  %v965_v62 = vstv %s962_s21 }
 0x1ca   : > { %1518 = vmatprep.subr.bf16.mxu0 %v2003_v48  ;;  %v953_v60 = vadd.f32 %v952_v56, %v946_v53  ;;  %v966_v1 = vmul.f32 %v965_v62, %v964_v58 }
 0x1cc   : > { %v960_v0 = vadd.f32 %v959_v61, %v953_v60  ;;  %v974_v3 = vstv %s971_s27 }
 0x1cd   : > { %1519 = vmatpush3.bf16.msra.mxu0 %v1697_v52  ;;  %v975_v7 = vmul.f32 %v974_v3, %v973_v63  ;;  %v981_v8 = vstv %s978_s17 }
 0x1ce   : > { %1520 = vmatprep.subr.bf16.mxu0 %v2003_v48  ;;  %v967_v6 = vadd.f32 %v966_v1, %v960_v0  ;;  %v982_v9 = vmul.f32 %v981_v8, %v980_v2  ;;  %v988_v10 = vstv %s985_s28 }
 0x1cf   : > { %v989_v12 = vmul.f32 %v988_v10, %v987_v4 }
 0x1d0   : > { %v976_v11 = vadd.f32 %v975_v7, %v967_v6 }
 0x1d1   : > { %1521 = vmatpush3.bf16.msra.mxu0 %v1698_v59 }
 0x1d2   : > { %1522 = vmatprep.subr.bf16.mxu0 %v2003_v48  ;;  %v983_v14 = vadd.f32 %v982_v9, %v976_v11 }
 0x1d4   : > { %v990_v15 = vadd.f32 %v989_v12, %v983_v14 }
 0x1d5   : > { %1523 = vmatpush3.bf16.msra.mxu0 %v1699_v5 }
 0x1d6   : > { %1524 = vmatprep.subr.bf16.mxu0 %v2003_v48  ;;  %v991_v17 = vmax.f32 %v990_v15, 0.0 }
 0x1d8   : > { %v992_v18 = vpack.c.bf16 %v991_v17, %v991_v17 }
 0x1d9   : > { %1525 = vmatpush3.bf16.msra.mxu0 %v1700_v13 }
 0x1da   : > { %1526 = vmatprep.subr.bf16.mxu0 %v2003_v48 }
 0x1dd   : > { %1527 = vmatpush3.bf16.msra.mxu0 %v1701_v16 }
 0x1de   : > { %1532 = vmatprep.subr.bf16.mxu0 (!%p1414_p5), %v2005_v26 }
 0x1e0   : > { %1529 = vmatmul.mubr.bf16.vlgmr.msra.gmra.mrb[0].mxu0 %v992_v18 }
 0x1e1   : > { %1548 = vmatprep.mubr.msk.bf16.mxu0 (!%p1414_p5), %vm2006_vm4, %v2005_v26 }
 0x1e6   : > { %1533 = vmatpush3.bf16.xpose.msra.mxu0 (!%p1414_p5), %v1702_v25 }
 0x1e7   : > { %1534 = vmatprep.subr.bf16.mxu0 (!%p1414_p5), %v2005_v26 }
 0x1ee   : > { %1535 = vmatpush3.bf16.xpose.msra.mxu0 (!%p1414_p5), %v1703_v27 }
 0x1ef   : > { %1536 = vmatprep.subr.bf16.mxu0 (!%p1414_p5), %v2005_v26 }
 0x1f6   : > { %1537 = vmatpush3.bf16.xpose.msra.mxu0 (!%p1414_p5), %v1704_v28 }
 0x1f7   : > { %1538 = vmatprep.subr.bf16.mxu0 (!%p1414_p5), %v2005_v26 }
 0x1fe   : > { %1539 = vmatpush3.bf16.xpose.msra.mxu0 (!%p1414_p5), %v1705_v29 }
 0x1ff   : > { %1540 = vmatprep.subr.bf16.mxu0 (!%p1414_p5), %v2005_v26 }
 0x206   : > { %1541 = vmatpush3.bf16.xpose.msra.mxu0 (!%p1414_p5), %v1706_v30 }
 0x207   : > { %1542 = vmatprep.subr.bf16.mxu0 (!%p1414_p5), %v2005_v26 }
 0x20e   : > { %1543 = vmatpush3.bf16.xpose.msra.mxu0 (!%p1414_p5), %v1707_v31 }
 0x20f   : > { %1544 = vmatprep.subr.bf16.mxu0 (!%p1414_p5), %v2005_v26 }
 0x216   : > { %1545 = vmatpush3.bf16.xpose.msra.mxu0 (!%p1414_p5), %v1708_v32 }
 0x217   : > { %1546 = vmatprep.subr.bf16.mxu0 (!%p1414_p5), %v2005_v26 }
 0x21e   : > { %1547 = vmatpush3.bf16.xpose.msra.mxu0 (!%p1414_p5), %v1709_v33 }
 0x2b0   : > { %1103 = sbr.rel (%p1414_p5) target bundleno = 921 (0x399), region = 96 }
 0x2b3   : > { %v1092_v20 = vpop.f32.mrb[0].mxu0 }
 0x2b4   : > { %v1098_v21 = vadd.f32 %v1092_v20, %v1009_v19  ;;  %v1530_v22 = vpop.f32.mrb[1].mxu0 }
 0x2b5   : > { %v1095_v23 = vpop.f32.mrb[2].mxu0 }
 0x2b6   : > { %1099 = vst [vmem:[#allocation2] sm:$0xff] %v1098_v21  ;;  %v1531_v24 = vpop.f32.mrb[3].mxu0 }
 0x2bd   : > { %v1104_v34 = vld [vmem:[#allocation2] sm:$0xff] }
 0x2be   : > { %v1105_v35 = vmax.f32 %v1104_v34, 0.0 }
 0x2c0   : > { %v1106_v36 = vpack.c.bf16 %v1105_v35, %v1105_v35 }
 0x2c2   : > { %1549 = vmatmul.mubr.bf16.vlgmr.msra.gmra.mrb[0].mxu0 %v1106_v36 }
 0x395   : > { %v1205_v37 = vpop.f32.mrb[0].mxu0 }
 0x396   : > { %1211 = vst [vmem:[#allocation18] sm:$0xff] %v1205_v37  ;;  %v1550_v38 = vpop.f32.mrb[1].mxu0 }
 0x397   : > { %v1208_v39 = vpop.f32.mrb[2].mxu0 }
 0x398   : > { %v1551_v40 = vpop.f32.mrb[3].mxu0 }
 0x399 PF: > { %p1627_p1 = scmp.eq.s32.totalorder %s2089_s15, 3  ;;  %s2007_s0 = smov [#allocation18]  }
 0x39a   : > { %s1221_s12 = sshll.u32 %s2007_s0, 4  ;;  %s1222_s12 = int_to_ptr.vmem [resolvable:$true] %s1221_s12 }
 0x39b   : > { %s1884_s26 = scalar_lea.vmem %s1222_s12, 128  ;;  %p1891_p0 = scmp.lt.s32.totalorder %s1222_s12, %s1222_s12 }
 0x39c   : > { %p1885_p11 = scmp.ne.s32.totalorder %s1222_s12, %s1884_s26  ;;  %p1892_p4 = scmp.lt.s32.totalorder %s1884_s26, %s1884_s26 }
 0x39e   : > { %p1886_p12 = pnand %p1885_p11, %p1627_p1  ;;  %p1893_p2 = por %p1892_p4, %p1891_p0 }
 0x3a0   : > { %p1887_p13 = pneg %p1886_p12 }
 0x3a2   : > { %p1894_p6 = pnand %p1893_p2, %p1887_p13 }
 0x3a4   : > { %1897 = shalt.err (!%p1894_p6)
}
 0x3a5   : > { %s1898_s16 = scalar_lea.hbm %s2426_s9, 128 }
 0x3a6   : > { %p1899_p9 = scmp.ne.s32.totalorder %s2426_s9, %s1898_s16  ;;  %p1904_p10 = scmp.lt.u32.totalorder %s1898_s16, %s2426_s9 }
 0x3a8   : > { %p1900_p7 = pnand %p1899_p9, %p1627_p1 }
 0x3aa   : > { %p1901_p3 = pneg %p1900_p7 }
 0x3ac   : > { %p1906_p8 = pnand %p1904_p10, %p1901_p3 }
 0x3ae   : > { %1909 = shalt.err (!%p1906_p8)
}
 0x3af   : > { %1583 = dma.vmem_to_hbm [thread:$0]  (%p1627_p1), %s1222_s12, 128, %s2426_s9, [#allocation6]  }
 0x3b0   : > { %1963 = dma.done.wait (%p1627_p1), [#allocation6], 128  }
 0x3b1   : > { %1965 = vsyncadd (%p1627_p1), [#allocation6], 4294967168 }
 0x3b2 PF: > { %s25_s14 = sadd.s32 1, %s1988_s14   ;;  %s2458_s30 = smov %s1972_s10 }
 0x3b3   : > { %p22_p5 = scmp.ge.s32.totalorder %s25_s14, 6   ;;  %s2459_s10 = smov %s1976_s11 }
 0x3b4   : > { %s2460_s11 = smov %s2240_s3  ;;  %s2461_s12 = smov %s1984_s13 }
 0x3b5   : > { %s2462_s13 = smov %s2464_s23  ;;  %24 = sbr.rel (!%p22_p5) target bundleno = 11 (0xb), region = 142 }
 0x3bc   :  { %1234 = vsyncpa [#allocation5], 1 }
 0x3bd   :  { %1236 = vsyncpa [#allocation5 + $0x1], 1 }
 0x3be   :  { %1237 = vsyncpa [#allocation9], 1 }
 0x3bf   :  { %1238 = vsyncpa [#allocation6], 1 }
 0x3c0   :  { %1240 = vsyncpa [#allocation6 + $0x1], 1 }
 0x3c1   :  { %1241 = vsyncpa [#allocation7], 1 }
 0x3c2   :  { %1243 = vsyncpa [#allocation7 + $0x1], 1 }
 0x3c3   :  { %1244 = vsyncpa [#allocation12], 1 }
 0x3c4   :  { %1245 = vsyncpa [#allocation15], 1 }

</bundles_post_ra>
